<compile_context>
chip_gen: v6e
topology: v6e:2x2x1
jax: 0.10.0
libtpu: 0.0.40
codegen_flags: <defaults>
</compile_context>

<pallas_src>
import numpy as np
import jax
import jax.numpy as jnp
from jax import lax
from jax.experimental import pallas as pl
from jax.experimental.pallas import tpu as pltpu


def _grd_kernel(frontier_ref, dist_ref, extras_ref, rr_ref, cc_ref, out_ref):
    # frontier_ref : (1, 1, M)  raw values of inputs[:, 1] (frontier where > 0)
    # dist_ref     : (1, A, M)  agent -> cell distances
    # extras_ref   : (1, A, 6)  cols 2:6 = [row_min, row_max, col_min, col_max]
    # rr_ref/cc_ref: (1, M)     float row / col index of every flattened cell
    # out_ref      : (1, A, M)  dense assignment map (40.0 at chosen cells)
    A = dist_ref.shape[1]
    M = out_ref.shape[-1]

    frontier = frontier_ref[0] > 0.0                       # (1, M) bool
    d = dist_ref[0].astype(jnp.float32)                    # (A, M)
    ex = extras_ref[0].astype(jnp.float32)                 # (A, 6)
    rr = rr_ref[...]                                       # (1, M)
    cc = cc_ref[...]                                       # (1, M)

    rmin = ex[:, 2:3]                                      # (A, 1)
    rmax = ex[:, 3:4]
    cmin = ex[:, 4:5]
    cmax = ex[:, 5:6]

    # outside-local-map test, then the <0.1 clamp, then hide non-frontier cells
    invalid = (rr < rmin) | (cc < cmin) | (rr >= rmax) | (cc >= cmax)   # (A, M)
    d = jnp.where(invalid, 4.0, d)
    d = jnp.where(d < 0.1, 2.0, d)
    d = jnp.where(frontier, d, 1e30)   # non-frontier cells can never win the argmin

    col_ids = lax.broadcasted_iota(jnp.int32, (1, M), 1)   # (1, M)
    row_ids = lax.broadcasted_iota(jnp.int32, (A, M), 0)   # (A, M)

    chosens = jnp.zeros((A, M), jnp.float32)
    # Greedy sequential assignment — small static agent count, unrolled.
    for a in range(A):
        row = d[a:a + 1, :]                                              # (1, M)
        minv = jnp.min(row, axis=1, keepdims=True)                       # (1, 1)
        # first index achieving the minimum (== torch/np argmin tie-breaking)
        chosen = jnp.min(jnp.where(row == minv, col_ids, jnp.int32(M)),
                         axis=1, keepdims=True)                          # (1, 1) int32
        hit = col_ids == chosen                                          # (1, M)
        chosens = jnp.where((row_ids == a) & hit, 40.0, chosens)
        d = jnp.where(hit, 2.0, d)                                       # column taken for all agents

    out_ref[0] = chosens.astype(out_ref.dtype)


@jax.jit
def _grd_forward(inputs, dist, extras):
    B, C, H, W = inputs.shape
    A = dist.shape[1]
    M = H * W

    frontier_vals = inputs.reshape(B, C, M)[:, 1:2, :]          # (B, 1, M)
    dist_flat = dist.reshape(B, A, M)                           # (B, A, M)
    extras_r = extras.reshape(B, A, 6).astype(jnp.float32)      # (B, A, 6)

    rc = np.indices((H, W))                                     # compile-time constants
    rr = jnp.asarray(rc[0].reshape(1, M), jnp.float32)
    cc = jnp.asarray(rc[1].reshape(1, M), jnp.float32)

    return pl.pallas_call(
        _grd_kernel,
        out_shape=jax.ShapeDtypeStruct((B, A, M), jnp.float32),
        grid=(B,),
        in_specs=[
            pl.BlockSpec((1, 1, M), lambda b: (b, 0, 0)),
            pl.BlockSpec((1, A, M), lambda b: (b, 0, 0)),
            pl.BlockSpec((1, A, 6), lambda b: (b, 0, 0)),
            pl.BlockSpec((1, M), lambda b: (0, 0)),
            pl.BlockSpec((1, M), lambda b: (0, 0)),
        ],
        out_specs=pl.BlockSpec((1, A, M), lambda b: (b, 0, 0)),
        compiler_params=pltpu.CompilerParams(dimension_semantics=("parallel",)),
        cost_estimate=pl.CostEstimate(
            flops=B * A * M * 16,
            transcendentals=0,
            bytes_accessed=4 * (B * M + 2 * B * A * M + B * A * 6 + 2 * M),
        ),
    )(frontier_vals, dist_flat, extras_r, rr, cc)


class GRDActorPallas:
    """Pallas-TPU equivalent of GRDActor.forward (greedy agent -> frontier assignment)."""

    def __call__(self, inputs, dist, pos_history, goal_history, extras):
        # pos_history / goal_history are unused by the reference forward pass.
        return _grd_forward(inputs, dist, extras)


if __name__ == "__main__":
    B, C, H, W = 2, 4, 16, 16
    A = 4
    M = H * W

    root = jax.random.PRNGKey(0)
    k_in, k_front, k_dist, k_lmb = jax.random.split(root, 4)

    # inputs: channel 1 is the frontier map (positive where a frontier cell exists)
    inputs = jax.random.normal(k_in, (B, C, H, W), jnp.float32)
    frontier_map = (jax.random.uniform(k_front, (B, H, W)) < 0.15).astype(jnp.float32)
    inputs = inputs.at[:, 1, :, :].set(frontier_map)

    # agent -> cell distances; some < 0.1 to exercise the 2.0 clamp branch
    dist = jax.random.uniform(k_dist, (B, A, H, W), jnp.float32, 0.05, 8.0)

    # extras: (B, A*6); per agent cols 2:6 = [row_min, row_max, col_min, col_max]
    lo = jax.random.randint(k_lmb, (B, A, 2), 0, 4).astype(jnp.float32)
    hi = lo + jnp.float32(10.0)
    extras = jnp.concatenate(
        [jnp.zeros((B, A, 2), jnp.float32),
         lo[..., 0:1], hi[..., 0:1], lo[..., 1:2], hi[..., 1:2]],
        axis=-1).reshape(B, A * 6)

    pos_history = jnp.zeros((B, A, 2), jnp.float32)     # unused by forward
    goal_history = jnp.zeros((B, A, 2), jnp.float32)    # unused by forward

    actor = GRDActorPallas()
    out = actor(inputs, dist, pos_history, goal_history, extras)
    out = jax.block_until_ready(out)
    assert out.shape == (B, A, M)

    # ---- numpy reference mirroring the torch code, for a correctness check ----
    inputs_np = np.asarray(inputs)
    dist_np = np.asarray(dist)
    extras_np = np.asarray(extras).reshape(B, A, 6)
    out_np = np.asarray(out)

    for b in range(B):
        fmask = inputs_np[b, 1] > 0
        fidx = np.argwhere(fmask)                         # (F, 2), row-major == torch nonzero
        dist_lst = dist_np[b][:, fmask].copy()            # (A, F)
        lmb = extras_np[b, :, 2:]
        inv = ((fidx[None, :, 0] < lmb[:, None, 0]) |
               (fidx[None, :, 1] < lmb[:, None, 2]) |
               (fidx[None, :, 0] >= lmb[:, None, 1]) |
               (fidx[None, :, 1] >= lmb[:, None, 3]))
        dist_lst[inv] = 4.0
        dist_lst[dist_lst < 0.1] = 2.0
        chosens = np.zeros_like(dist_lst)
        for a in range(A):
            ch = np.argmin(dist_lst[a])
            dist_lst[:, ch] = 2.0
            chosens[a, ch] = 40.0
        flat_idx = fidx[:, 0] * W + fidx[:, 1]
        got = out_np[b][:, flat_idx]
        assert np.array_equal(got, chosens), f"mismatch in batch {b}"
        nonf = np.setdiff1d(np.arange(M), flat_idx)
        assert np.all(out_np[b][:, nonf] == 0.0)

    print("KERNEL_OK")
</pallas_src>

<mosaic_0001>
module attributes {stable_mosaic.version = 11 : i64} {
  func.func @_grd_kernel(%arg0: i32, %arg1: memref<1x1x256xf32, #tpu.memory_space<vmem>>, %arg2: memref<1x4x256xf32, #tpu.memory_space<vmem>>, %arg3: memref<1x4x6xf32, #tpu.memory_space<vmem>>, %arg4: memref<1x256xf32, #tpu.memory_space<vmem>>, %arg5: memref<1x256xf32, #tpu.memory_space<vmem>>, %arg6: memref<1x4x256xf32, #tpu.memory_space<vmem>>) attributes {dimension_semantics = [#tpu.dimension_semantics<parallel>], iteration_bounds = array<i64: 2>, scalar_prefetch = 0 : i64, scratch_operands = 0 : i64, tpu.core_type = #tpu.core_type<tc>, window_params = [{transform_indices = @transform_0, window_bounds = array<i64: 1, 1, 256>}, {transform_indices = @transform_1, window_bounds = array<i64: 1, 4, 256>}, {transform_indices = @transform_2, window_bounds = array<i64: 1, 4, 6>}, {pipeline_mode = #tpu.pipeline_mode<synchronous>, transform_indices = @transform_3, window_bounds = array<i64: 1, 256>}, {pipeline_mode = #tpu.pipeline_mode<synchronous>, transform_indices = @transform_4, window_bounds = array<i64: 1, 256>}, {transform_indices = @transform_5, window_bounds = array<i64: 1, 4, 256>}]} {
    %c0 = arith.constant 0 : index
    %c0_0 = arith.constant 0 : index
    %c0_1 = arith.constant 0 : index
    %0 = vector.load %arg1[%c0, %c0_0, %c0_1] : memref<1x1x256xf32, #tpu.memory_space<vmem>>, vector<1x1x256xf32>
    %1 = vector.shape_cast %0 : vector<1x1x256xf32> to vector<1x256xf32>
    %cst = arith.constant 0.000000e+00 : f32
    %2 = vector.broadcast %cst : f32 to vector<1x256xf32>
    %3 = arith.cmpf ogt, %1, %2 : vector<1x256xf32>
    %c0_2 = arith.constant 0 : index
    %c0_3 = arith.constant 0 : index
    %c0_4 = arith.constant 0 : index
    %4 = vector.load %arg2[%c0_2, %c0_3, %c0_4] : memref<1x4x256xf32, #tpu.memory_space<vmem>>, vector<1x4x256xf32>
    %5 = vector.shape_cast %4 : vector<1x4x256xf32> to vector<4x256xf32>
    %c0_5 = arith.constant 0 : index
    %c0_6 = arith.constant 0 : index
    %c0_7 = arith.constant 0 : index
    %6 = vector.load %arg3[%c0_5, %c0_6, %c0_7] : memref<1x4x6xf32, #tpu.memory_space<vmem>>, vector<1x4x6xf32>
    %7 = vector.shape_cast %6 : vector<1x4x6xf32> to vector<4x6xf32>
    %c0_8 = arith.constant 0 : index
    %c0_9 = arith.constant 0 : index
    %8 = vector.load %arg4[%c0_8, %c0_9] : memref<1x256xf32, #tpu.memory_space<vmem>>, vector<1x256xf32>
    %c0_10 = arith.constant 0 : index
    %c0_11 = arith.constant 0 : index
    %9 = vector.load %arg5[%c0_10, %c0_11] : memref<1x256xf32, #tpu.memory_space<vmem>>, vector<1x256xf32>
    %10 = vector.extract_strided_slice %7 {offsets = [0, 2], sizes = [4, 1], strides = [1, 1]} : vector<4x6xf32> to vector<4x1xf32>
    %11 = vector.extract_strided_slice %7 {offsets = [0, 3], sizes = [4, 1], strides = [1, 1]} : vector<4x6xf32> to vector<4x1xf32>
    %12 = vector.extract_strided_slice %7 {offsets = [0, 4], sizes = [4, 1], strides = [1, 1]} : vector<4x6xf32> to vector<4x1xf32>
    %13 = vector.extract_strided_slice %7 {offsets = [0, 5], sizes = [4, 1], strides = [1, 1]} : vector<4x6xf32> to vector<4x1xf32>
    %14 = vector.broadcast %8 : vector<1x256xf32> to vector<4x256xf32>
    %15 = vector.broadcast %10 : vector<4x1xf32> to vector<4x256xf32>
    %16 = arith.cmpf olt, %14, %15 : vector<4x256xf32>
    %17 = vector.broadcast %9 : vector<1x256xf32> to vector<4x256xf32>
    %18 = vector.broadcast %12 : vector<4x1xf32> to vector<4x256xf32>
    %19 = arith.cmpf olt, %17, %18 : vector<4x256xf32>
    %20 = arith.ori %16, %19 : vector<4x256xi1>
    %21 = vector.broadcast %8 : vector<1x256xf32> to vector<4x256xf32>
    %22 = vector.broadcast %11 : vector<4x1xf32> to vector<4x256xf32>
    %23 = arith.cmpf oge, %21, %22 : vector<4x256xf32>
    %24 = arith.ori %20, %23 : vector<4x256xi1>
    %25 = vector.broadcast %9 : vector<1x256xf32> to vector<4x256xf32>
    %26 = vector.broadcast %13 : vector<4x1xf32> to vector<4x256xf32>
    %27 = arith.cmpf oge, %25, %26 : vector<4x256xf32>
    %28 = arith.ori %24, %27 : vector<4x256xi1>
    %cst_12 = arith.constant 4.000000e+00 : f32
    %29 = vector.broadcast %cst_12 : f32 to vector<4x256xf32>
    %30 = arith.select %28, %29, %5 : vector<4x256xi1>, vector<4x256xf32>
    %cst_13 = arith.constant 1.000000e-01 : f32
    %31 = vector.broadcast %cst_13 : f32 to vector<4x256xf32>
    %32 = arith.cmpf olt, %30, %31 : vector<4x256xf32>
    %cst_14 = arith.constant 2.000000e+00 : f32
    %33 = vector.broadcast %cst_14 : f32 to vector<4x256xf32>
    %34 = arith.select %32, %33, %30 : vector<4x256xi1>, vector<4x256xf32>
    %cst_15 = arith.constant 1.000000e+30 : f32
    %35 = vector.shape_cast %3 : vector<1x256xi1> to vector<1x256xi1>
    %36 = vector.broadcast %35 : vector<1x256xi1> to vector<4x256xi1>
    %37 = vector.broadcast %cst_15 : f32 to vector<4x256xf32>
    %38 = arith.select %36, %34, %37 : vector<4x256xi1>, vector<4x256xf32>
    %39 = tpu.iota {dimensions = array<i32: 1>} : vector<1x256xi32>
    %40 = tpu.iota {dimensions = array<i32: 0>} : vector<4x256xi32>
    %cst_16 = arith.constant 0.000000e+00 : f32
    %41 = vector.broadcast %cst_16 : f32 to vector<4x256xf32>
    %42 = vector.extract_strided_slice %38 {offsets = [0, 0], sizes = [1, 256], strides = [1, 1]} : vector<4x256xf32> to vector<1x256xf32>
    %cst_17 = arith.constant dense<0x7F800000> : vector<1xf32>
    %43 = vector.multi_reduction <minimumf>, %42, %cst_17 [1] : vector<1x256xf32> to vector<1xf32>
    %44 = vector.shape_cast %43 : vector<1xf32> to vector<1x1xf32>
    %45 = vector.broadcast %44 : vector<1x1xf32> to vector<1x256xf32>
    %46 = arith.cmpf oeq, %42, %45 : vector<1x256xf32>
    %c256_i32 = arith.constant 256 : i32
    %47 = vector.broadcast %c256_i32 : i32 to vector<1x256xi32>
    %48 = arith.select %46, %39, %47 : vector<1x256xi1>, vector<1x256xi32>
    %cst_18 = arith.constant dense<2147483647> : vector<1xi32>
    %49 = vector.multi_reduction <minsi>, %48, %cst_18 [1] : vector<1x256xi32> to vector<1xi32>
    %50 = vector.shape_cast %49 : vector<1xi32> to vector<1x1xi32>
    %51 = vector.broadcast %50 : vector<1x1xi32> to vector<1x256xi32>
    %52 = arith.cmpi eq, %39, %51 : vector<1x256xi32>
    %c0_i32 = arith.constant 0 : i32
    %53 = vector.broadcast %c0_i32 : i32 to vector<4x256xi32>
    %54 = arith.cmpi eq, %40, %53 : vector<4x256xi32>
    %55 = vector.broadcast %52 : vector<1x256xi1> to vector<4x256xi1>
    %56 = arith.andi %54, %55 : vector<4x256xi1>
    %cst_19 = arith.constant 4.000000e+01 : f32
    %57 = vector.broadcast %cst_19 : f32 to vector<4x256xf32>
    %58 = arith.select %56, %57, %41 : vector<4x256xi1>, vector<4x256xf32>
    %cst_20 = arith.constant 2.000000e+00 : f32
    %59 = vector.shape_cast %52 : vector<1x256xi1> to vector<1x256xi1>
    %60 = vector.broadcast %59 : vector<1x256xi1> to vector<4x256xi1>
    %61 = vector.broadcast %cst_20 : f32 to vector<4x256xf32>
    %62 = arith.select %60, %61, %38 : vector<4x256xi1>, vector<4x256xf32>
    %63 = vector.extract_strided_slice %62 {offsets = [1, 0], sizes = [1, 256], strides = [1, 1]} : vector<4x256xf32> to vector<1x256xf32>
    %cst_21 = arith.constant dense<0x7F800000> : vector<1xf32>
    %64 = vector.multi_reduction <minimumf>, %63, %cst_21 [1] : vector<1x256xf32> to vector<1xf32>
    %65 = vector.shape_cast %64 : vector<1xf32> to vector<1x1xf32>
    %66 = vector.broadcast %65 : vector<1x1xf32> to vector<1x256xf32>
    %67 = arith.cmpf oeq, %63, %66 : vector<1x256xf32>
    %c256_i32_22 = arith.constant 256 : i32
    %68 = vector.broadcast %c256_i32_22 : i32 to vector<1x256xi32>
    %69 = arith.select %67, %39, %68 : vector<1x256xi1>, vector<1x256xi32>
    %cst_23 = arith.constant dense<2147483647> : vector<1xi32>
    %70 = vector.multi_reduction <minsi>, %69, %cst_23 [1] : vector<1x256xi32> to vector<1xi32>
    %71 = vector.shape_cast %70 : vector<1xi32> to vector<1x1xi32>
    %72 = vector.broadcast %71 : vector<1x1xi32> to vector<1x256xi32>
    %73 = arith.cmpi eq, %39, %72 : vector<1x256xi32>
    %c1_i32 = arith.constant 1 : i32
    %74 = vector.broadcast %c1_i32 : i32 to vector<4x256xi32>
    %75 = arith.cmpi eq, %40, %74 : vector<4x256xi32>
    %76 = vector.broadcast %73 : vector<1x256xi1> to vector<4x256xi1>
    %77 = arith.andi %75, %76 : vector<4x256xi1>
    %cst_24 = arith.constant 4.000000e+01 : f32
    %78 = vector.broadcast %cst_24 : f32 to vector<4x256xf32>
    %79 = arith.select %77, %78, %58 : vector<4x256xi1>, vector<4x256xf32>
    %cst_25 = arith.constant 2.000000e+00 : f32
    %80 = vector.shape_cast %73 : vector<1x256xi1> to vector<1x256xi1>
    %81 = vector.broadcast %80 : vector<1x256xi1> to vector<4x256xi1>
    %82 = vector.broadcast %cst_25 : f32 to vector<4x256xf32>
    %83 = arith.select %81, %82, %62 : vector<4x256xi1>, vector<4x256xf32>
    %84 = vector.extract_strided_slice %83 {offsets = [2, 0], sizes = [1, 256], strides = [1, 1]} : vector<4x256xf32> to vector<1x256xf32>
    %cst_26 = arith.constant dense<0x7F800000> : vector<1xf32>
    %85 = vector.multi_reduction <minimumf>, %84, %cst_26 [1] : vector<1x256xf32> to vector<1xf32>
    %86 = vector.shape_cast %85 : vector<1xf32> to vector<1x1xf32>
    %87 = vector.broadcast %86 : vector<1x1xf32> to vector<1x256xf32>
    %88 = arith.cmpf oeq, %84, %87 : vector<1x256xf32>
    %c256_i32_27 = arith.constant 256 : i32
    %89 = vector.broadcast %c256_i32_27 : i32 to vector<1x256xi32>
    %90 = arith.select %88, %39, %89 : vector<1x256xi1>, vector<1x256xi32>
    %cst_28 = arith.constant dense<2147483647> : vector<1xi32>
    %91 = vector.multi_reduction <minsi>, %90, %cst_28 [1] : vector<1x256xi32> to vector<1xi32>
    %92 = vector.shape_cast %91 : vector<1xi32> to vector<1x1xi32>
    %93 = vector.broadcast %92 : vector<1x1xi32> to vector<1x256xi32>
    %94 = arith.cmpi eq, %39, %93 : vector<1x256xi32>
    %c2_i32 = arith.constant 2 : i32
    %95 = vector.broadcast %c2_i32 : i32 to vector<4x256xi32>
    %96 = arith.cmpi eq, %40, %95 : vector<4x256xi32>
    %97 = vector.broadcast %94 : vector<1x256xi1> to vector<4x256xi1>
    %98 = arith.andi %96, %97 : vector<4x256xi1>
    %cst_29 = arith.constant 4.000000e+01 : f32
    %99 = vector.broadcast %cst_29 : f32 to vector<4x256xf32>
    %100 = arith.select %98, %99, %79 : vector<4x256xi1>, vector<4x256xf32>
    %cst_30 = arith.constant 2.000000e+00 : f32
    %101 = vector.shape_cast %94 : vector<1x256xi1> to vector<1x256xi1>
    %102 = vector.broadcast %101 : vector<1x256xi1> to vector<4x256xi1>
    %103 = vector.broadcast %cst_30 : f32 to vector<4x256xf32>
    %104 = arith.select %102, %103, %83 : vector<4x256xi1>, vector<4x256xf32>
    %105 = vector.extract_strided_slice %104 {offsets = [3, 0], sizes = [1, 256], strides = [1, 1]} : vector<4x256xf32> to vector<1x256xf32>
    %cst_31 = arith.constant dense<0x7F800000> : vector<1xf32>
    %106 = vector.multi_reduction <minimumf>, %105, %cst_31 [1] : vector<1x256xf32> to vector<1xf32>
    %107 = vector.shape_cast %106 : vector<1xf32> to vector<1x1xf32>
    %108 = vector.broadcast %107 : vector<1x1xf32> to vector<1x256xf32>
    %109 = arith.cmpf oeq, %105, %108 : vector<1x256xf32>
    %c256_i32_32 = arith.constant 256 : i32
    %110 = vector.broadcast %c256_i32_32 : i32 to vector<1x256xi32>
    %111 = arith.select %109, %39, %110 : vector<1x256xi1>, vector<1x256xi32>
    %cst_33 = arith.constant dense<2147483647> : vector<1xi32>
    %112 = vector.multi_reduction <minsi>, %111, %cst_33 [1] : vector<1x256xi32> to vector<1xi32>
    %113 = vector.shape_cast %112 : vector<1xi32> to vector<1x1xi32>
    %114 = vector.broadcast %113 : vector<1x1xi32> to vector<1x256xi32>
    %115 = arith.cmpi eq, %39, %114 : vector<1x256xi32>
    %c3_i32 = arith.constant 3 : i32
    %116 = vector.broadcast %c3_i32 : i32 to vector<4x256xi32>
    %117 = arith.cmpi eq, %40, %116 : vector<4x256xi32>
    %118 = vector.broadcast %115 : vector<1x256xi1> to vector<4x256xi1>
    %119 = arith.andi %117, %118 : vector<4x256xi1>
    %cst_34 = arith.constant 4.000000e+01 : f32
    %120 = vector.broadcast %cst_34 : f32 to vector<4x256xf32>
    %121 = arith.select %119, %120, %100 : vector<4x256xi1>, vector<4x256xf32>
    %c0_35 = arith.constant 0 : index
    %c0_36 = arith.constant 0 : index
    %c0_37 = arith.constant 0 : index
    %122 = vector.load %arg6[%c0_35, %c0_36, %c0_37] : memref<1x4x256xf32, #tpu.memory_space<vmem>>, vector<1x4x256xf32>
    %123 = vector.shape_cast %122 : vector<1x4x256xf32> to vector<4x256xf32>
    %124 = vector.shape_cast %121 : vector<4x256xf32> to vector<1x4x256xf32>
    tpu.vector_store %arg6[%c0_35, %c0_36, %c0_37], %124 {strides = array<i32>} : memref<1x4x256xf32, #tpu.memory_space<vmem>>, vector<1x4x256xf32>,
    return
  }
  func.func @transform_0(%arg0: i32) -> (i32, i32, i32) {
    %c0_i32 = arith.constant 0 : i32
    %c0_i32_0 = arith.constant 0 : i32
    %c0_i32_1 = arith.constant 0 : i32
    return %arg0, %c0_i32, %c0_i32_0 : i32, i32, i32
  }
  func.func @transform_1(%arg0: i32) -> (i32, i32, i32) {
    %c0_i32 = arith.constant 0 : i32
    %c0_i32_0 = arith.constant 0 : i32
    %c0_i32_1 = arith.constant 0 : i32
    return %arg0, %c0_i32, %c0_i32_0 : i32, i32, i32
  }
  func.func @transform_2(%arg0: i32) -> (i32, i32, i32) {
    %c0_i32 = arith.constant 0 : i32
    %c0_i32_0 = arith.constant 0 : i32
    %c0_i32_1 = arith.constant 0 : i32
    return %arg0, %c0_i32, %c0_i32_0 : i32, i32, i32
  }
  func.func @transform_3(%arg0: i32) -> (i32, i32) {
    %c0_i32 = arith.constant 0 : i32
    %c0_i32_0 = arith.constant 0 : i32
    %c0_i32_1 = arith.constant 0 : i32
    return %c0_i32, %c0_i32_0 : i32, i32
  }
  func.func @transform_4(%arg0: i32) -> (i32, i32) {
    %c0_i32 = arith.constant 0 : i32
    %c0_i32_0 = arith.constant 0 : i32
    %c0_i32_1 = arith.constant 0 : i32
    return %c0_i32, %c0_i32_0 : i32, i32
  }
  func.func @transform_5(%arg0: i32) -> (i32, i32, i32) {
    %c0_i32 = arith.constant 0 : i32
    %c0_i32_0 = arith.constant 0 : i32
    %c0_i32_1 = arith.constant 0 : i32
    return %arg0, %c0_i32, %c0_i32_0 : i32, i32, i32
  }
}

</mosaic_0001>

<bundles_post_ra>
// kernel: _grd_forward.1
= control target key start
LH: loop header
LB: loop body
LE: loop exit
PB: predicated region body
PF: predicated region fallthrough
CT: control target
= control target key end

     0   :  { %10 = vsyncpa [#allocation3], 0  ;;  %s1008_s0 = inlined_call_operand.vmem [shape: f32[2,1,256], index: 0, kind: input, shape index: {}]   ;;  %s1009_s1 = inlined_call_operand.vmem [shape: f32[2,4,256], index: 1, kind: input, shape index: {}]   ;;  %s1010_s2 = inlined_call_operand.vmem [shape: f32[2,4,6], index: 2, kind: input, shape index: {}]   ;;  %s1011_s3 = inlined_call_operand.vmem [shape: f32[1,256], index: 3, kind: input, shape index: {}]   ;;  %s1012_s4 = inlined_call_operand.vmem [shape: f32[1,256], index: 4, kind: input, shape index: {}]   ;;  %s1013_s5 = inlined_call_operand.hbm [shape: f32[2,4,256], index: 5, kind: output, shape index: {}]  }
   0x1   :  { %12 = vsyncpa [#allocation3 + $0x1], 0  ;;  %s806_s18 = smov 0   ;;  %s808_s19 = smov 0  }
   0x2   :  { %s810_s20 = smov 0   ;;  %s812_s21 = smov 0  }
   0x3 LB: > { %s827_s22 = sadd.s32 4294967295, %s767_s21   ;;  %s640_s23 = sadd.s32 4294967294, %s767_s21   ;;  %s767_s21 = sphi %s812_s21, %s1027_s21   ;;  %s763_s20 = sphi %s810_s20, %s1026_s20   ;;  %s759_s19 = sphi %s808_s19, %s1025_s19   ;;  %s755_s18 = sphi %s806_s18, %s1024_s18  }
   0x4   : > { %s831_s24 = sadd.s32 1, %s767_s21   ;;  %s145_s25 = sadd.s32 1, %s763_s20 }
   0x5   : > { %s142_s26 = ssub.s32 %s767_s21, %s831_s24  ;;  %p155_p0 = scmp.ne.s32.totalorder %s763_s20, %s759_s19 }
   0x6   : > { %p143_p1 = scmp.eq.s32.totalorder %s142_s26, 0  ;;  %p156_p2 = scmp.eq.s32.totalorder %s827_s22, 1 }
   0x7   : > { %p161_p3 = scmp.ne.s32.totalorder %s759_s19, %s755_s18  ;;  %p162_p4 = scmp.eq.s32.totalorder %s640_s23, 1 }
   0x8   : > { %s842_s27 = scalar_select %p143_p1, %s763_s20, %s145_s25  }
   0x9   : > { %p844_p5 = por %p156_p2, %p155_p0  ;;  %p848_p6 = por %p162_p4, %p161_p3 }
   0xa   : > { %p643_p7 = scmp.ge.s32.totalorder %s767_s21, 1  ;;  %p208_p8 = scmp.lt.s32.totalorder %s767_s21, 3 }
   0xc   : > { %p209_p9 = pnand %p643_p7, %p208_p8 }
   0xd   : > { %p244_p10 = scmp.lt.s32.totalorder (!%p209_p9), %s827_s22, 1  ;;  %s655_s8 = sshll.u32 (!%p209_p9), %s827_s22, 7 }
   0xe   : > { %212 = sbr.rel (%p209_p9) target bundleno = 1933 (0x78d), region = 40  ;;  %s775_s16 = smov (!%p209_p9), [#allocation2]  }
  0x13   : > { %v769_v0 = vmov 2   ;;  %v770_v1 = vmov 3   ;;  %s856_s30 = scalar_select %p244_p10, %s827_s22, 1  ;;  %v771_v3 = vmov 4   ;;  %v772_v4 = vmov 5  }
  0x14   : > { %701 = vset.pattern.permute.xlu0 %v769_v0  ;;  %703 = vset.pattern.permute.xlu1 %v770_v1  ;;  %v264_v5 = vlaneseq  ;;  %v261_v8 = vld [vmem:[%s1011_s3] sm:$0x3]  ;;  %v773_v20 = vmov 0   ;;  %s711_s22 = sshll.u32 %s775_s16, 4  ;;  %s712_s22 = int_to_ptr.vmem [resolvable:$false] %s711_s22 }
  0x15   : > { %s648_s6 = sshll.u32 %s856_s30, 2  ;;  %s645_s10 = sshll.u32 %s856_s30, 1  ;;  %v262_v10 = vld [vmem:[%s1012_s4] sm:$0x3] }
  0x16   : > { %s256_s9 = scalar_lea.vmem %s1010_s2, %s648_s6  ;;  %v862_v6 = vshrl.u32 %v264_v5, 7  ;;  %s247_s13 = scalar_lea.vmem %s1008_s0, %s645_s10  ;;  %v893_v35 = vand.u32 127, %v264_v5 }
  0x17   : > { %v260_v2 = vld [vmem:[%s256_s9] sm:$0xf]  ;;  %s654_s23 = sshll.u32 %s856_s30, 3  ;;  %s241_s30 = sand.u32 1, %s759_s19  }
  0x18   : > { %276 = vperm.xlu0 %701, %v260_v2   ;;  %301 = vperm.xlu1 %703, %v260_v2   ;;  %v869_v7 = vsub.s32 0, %v862_v6  ;;  %v875_v9 = vsub.s32 1, %v862_v6  ;;  %v257_v11 = vld [vmem:[%s247_s13] sm:$0x3]  ;;  %s252_s6 = scalar_lea.vmem %s1009_s1, %s654_s23  ;;  %v896_v36 = vadd.s32 128, %v893_v35  ;;  %s644_s7 = sshll.u32 %s241_s30, 3 }
  0x19   : > { %vm258_vm0 = vcmp.gt.f32.partialorder %v257_v11, 0.0  ;;  %v259_v22 = vld [vmem:[%s252_s6] sm:$0xff]  ;;  %s243_s9 = scalar_lea.vmem [#allocation2], %s644_s7  ;;  %s555_s13 = scalar_lea.hbm %s1013_s5, %s655_s8 }
  0x1a   : > { %v267_v14 = vrot.slane %v261_v8, %v869_v7  ;;  %v285_v15 = vrot.slane %v262_v10, %v869_v7  ;;  %v289_v16 = vrot.slane %v262_v10, %v875_v9  ;;  %v271_v17 = vrot.slane %v261_v8, %v875_v9  ;;  %s557_s10 = sshll.u32 %s243_s9, 4  ;;  %s543_s14 = scalar_lea.sflag [#allocation3], %s241_s30  ;;  %s558_s10 = int_to_ptr.vmem [resolvable:$true] %s557_s10 }
  0x1b   : > { %v325_v21 = vsel %vm258_vm0, 1, %v773_v20  ;;  %v317_v24 = vcombine.high %v259_v22, %v259_v22  ;;  %s707_s15 = scalar_lea.vmem %s558_s10, 128  ;;  %s713_s17 = scalar_lea.vmem %s712_s22, 256 }
  0x1c   : > { %702 = vset.pattern.permute.xlu0 %v771_v3  ;;  %704 = vset.pattern.permute.xlu1 %v772_v4  ;;  %v329_v23 = vrot.slane %v325_v21, %v869_v7  ;;  %v333_v25 = vrot.slane %v325_v21, %v875_v9  ;;  %p708_p11 = scmp.ne.s32.totalorder %s558_s10, %s707_s15  ;;  %p714_p0 = scmp.lt.s32.totalorder %s558_s10, %s712_s22 }
  0x1d   : > { %293 = vperm.xlu0 %702, %v260_v2   ;;  %309 = vperm.xlu1 %704, %v260_v2   ;;  %p715_p1 = scmp.lt.s32.totalorder %s713_s17, %s707_s15 }
  0x1e   : > { %vm334_vm15 = vcmp.eq.s32.totalorder %v329_v23, 1  ;;  %p709_p12 = pnand %p708_p11, %p844_p5 }
  0x1f   : > { %p716_p2 = por %p715_p1, %p714_p0 }
  0x20   : > { %p710_p13 = pneg %p709_p12 }
  0x21   : > { %705 = vset.pattern.permute.xlu0 %v772_v4 }
  0x22   : > { %p717_p3 = pnand %p716_p2, %p710_p13 }
  0x93   : > { %v277_v12 = vpop.permute.xlu0 %276  ;;  %v302_v13 = vpop.permute.xlu1 %301 }
  0x94   : > { %vm279_vm1 = vcmp.lt.f32.partialorder %v267_v14, %v277_v12  ;;  %vm280_vm4 = vcmp.lt.f32.partialorder %v271_v17, %v277_v12  ;;  %vm304_vm6 = vcmp.ge.f32.partialorder %v267_v14, %v302_v13  ;;  %vm305_vm9 = vcmp.ge.f32.partialorder %v271_v17, %v302_v13 }
  0x98   : > { %v294_v18 = vpop.permute.xlu0 %293  ;;  %v310_v19 = vpop.permute.xlu1 %309 }
  0x99   : > { %vm296_vm2 = vcmp.lt.f32.partialorder %v285_v15, %v294_v18  ;;  %vm297_vm3 = vcmp.lt.f32.partialorder %v289_v16, %v294_v18  ;;  %vm312_vm8 = vcmp.ge.f32.partialorder %v285_v15, %v310_v19  ;;  %vm313_vm11 = vcmp.ge.f32.partialorder %v289_v16, %v310_v19 }
  0x9a   : > { %vm298_vm5 = vmor %vm279_vm1, %vm296_vm2  ;;  %vm335_vm1 = vcmp.eq.s32.totalorder %v333_v25, 1  ;;  %vm343_vm2 = vcmask 1040384   ;;  %v774_v25 = vmov 0.0  }
  0x9b   : > { %vm299_vm7 = vmor %vm280_vm4, %vm297_vm3 }
  0x9c   : > { %vm306_vm10 = vmor %vm298_vm5, %vm304_vm6 }
  0x9d   : > { %vm307_vm12 = vmor %vm299_vm7, %vm305_vm9 }
  0x9e   : > { %vm314_vm13 = vmor %vm306_vm10, %vm312_vm8  ;;  %vm392_vm10 = vcmask 1041409  }
  0x9f   : > { %vm315_vm14 = vmor %vm307_vm12, %vm313_vm11  ;;  %v319_v26 = vsel %vm314_vm13, 4.0, %v259_v22 }
  0xa0   : > { %v320_v27 = vsel %vm315_vm14, 4.0, %v317_v24  ;;  %vm321_vm0 = vcmp.lt.f32.partialorder %v319_v26, 0.1 }
  0xa1   : > { %vm322_vm3 = vcmp.lt.f32.partialorder %v320_v27, 0.1  ;;  %v323_v28 = vsel %vm321_vm0, 2.0, %v319_v26 }
  0xa2   : > { %v324_v29 = vsel %vm322_vm3, 2.0, %v320_v27  ;;  %v336_v30 = vsel %vm334_vm15, %v323_v28, 1e+30 }
  0xa3   : > { %v337_v31 = vsel %vm335_vm1, %v324_v29, 1e+30  ;;  %v344_v32 = vsel %vm343_vm2, %v336_v30, inf  ;;  %vm373_vm1 = vcmp.eq.s32.totalorder %v862_v6, 0 }
  0xa4   : > { %v345_v33 = vsel %vm343_vm2, %v337_v31, inf }
  0xa5   : > { %v346_v34 = vmin.f32 %v344_v32, %v345_v33 }
  0xa7   : > { %347 = vmin.xlane.f32.xlu1 %v346_v34 }
 0x130   : > { %v348_v37 = vpop.xlane.xlu1 %347 }
 0x131   : > { %vm349_vm4 = vcmp.eq.f32.partialorder %v336_v30, %v348_v37  ;;  %vm350_vm5 = vcmp.eq.f32.partialorder %v337_v31, %v348_v37 }
 0x132   : > { %v351_v38 = vsel %vm349_vm4, %v893_v35, 256  ;;  %v352_v39 = vsel %vm350_vm5, %v896_v36, 256  ;;  %vm422_vm5 = vcmp.eq.s32.totalorder %v862_v6, 1 }
 0x133   : > { %v353_v40 = vsel %vm343_vm2, %v351_v38, 2147483647  ;;  %v354_v41 = vsel %vm343_vm2, %v352_v39, 2147483647 }
 0x134   : > { %vm355_vm6 = vcmp.lt.s32.totalorder %v353_v40, %v354_v41 }
 0x135   : > { %v356_v42 = vsel %vm355_vm6, %v353_v40, %v354_v41 }
 0x136   : > { %v358_v43 = vshra.s32 %v356_v42, 16  ;;  %v357_v45 = vand.u32 65535, %v356_v42 }
 0x138   : > { %v360_v44 = vcvt.s32.f32 %v358_v43  ;;  %v359_v47 = vcvt.s32.f32 %v357_v45 }
 0x13a   : > { %361 = vmin.xlane.f32.xlu0 %v360_v44 }
 0x1c3   : > { %v362_v46 = vpop.xlane.xlu0 %361 }
 0x1c4   : > { %vm363_vm7 = vcmp.eq.f32.partialorder %v360_v44, %v362_v46  ;;  %v368_v49 = vcvt.f32.s32 %v362_v46 }
 0x1c5   : > { %v364_v48 = vsel %vm363_vm7, %v359_v47, inf  ;;  %vm441_vm7 = vcmask 1042434  }
 0x1c6   : > { %365 = vmin.xlane.f32.xlu0 %v364_v48  ;;  %v369_v51 = vshll.u32 %v368_v49, 16 }
 0x24f   : > { %v366_v50 = vpop.xlane.xlu0 %365 }
 0x250   : > { %v367_v52 = vcvt.f32.s32 %v366_v50 }
 0x252   : > { %v370_v53 = vadd.s32 %v369_v51, %v367_v52 }
 0x254   : > { %vm371_vm8 = vcmp.eq.s32.totalorder %v893_v35, %v370_v53  ;;  %vm372_vm9 = vcmp.eq.s32.totalorder %v896_v36, %v370_v53 }
 0x255   : > { %v374_v54 = vsel %vm371_vm8, 1, %v773_v20  ;;  %v375_v55 = vsel %vm372_vm9, 1, %v773_v20 }
 0x256   : > { %v379_v56 = vrot.slane %v374_v54, %v869_v7  ;;  %v383_v57 = vrot.slane %v375_v55, %v869_v7  ;;  %v476_v55 = vsub.s32 2, %v862_v6 }
 0x258   : > { %vm908_vm11 = vcmp.eq.s32.totalorder %v379_v56, 1  ;;  %vm912_vm12 = vcmp.eq.s32.totalorder %v383_v57, 1 }
 0x259   : > { %v390_v60 = vsel %vm908_vm11, 2.0, %v336_v30  ;;  %v391_v61 = vsel %vm912_vm12, 2.0, %v337_v31  ;;  %vm387_vm4 = vmand %vm373_vm1, %vm912_vm12 }
 0x25a   : > { %v393_v62 = vsel %vm392_vm10, %v390_v60, inf  ;;  %v394_v63 = vsel %vm392_vm10, %v391_v61, inf  ;;  %vm386_vm6 = vmand %vm373_vm1, %vm908_vm11  ;;  %v389_v26 = vsel %vm387_vm4, 40.0, %v774_v25 }
 0x25b   : > { %v395_v0 = vmin.f32 %v393_v62, %v394_v63  ;;  %v388_v30 = vsel %vm386_vm6, 40.0, %v774_v25 }
 0x25d   : > { %396 = vmin.xlane.f32.xlu1 %v395_v0 }
 0x2e6   : > { %v397_v1 = vpop.xlane.xlu1 %396 }
 0x2e7   : > { %vm398_vm13 = vcmp.eq.f32.partialorder %v390_v60, %v397_v1  ;;  %vm399_vm14 = vcmp.eq.f32.partialorder %v391_v61, %v397_v1 }
 0x2e8   : > { %v400_v2 = vsel %vm398_vm13, %v893_v35, 256  ;;  %v401_v3 = vsel %vm399_vm14, %v896_v36, 256 }
 0x2e9   : > { %v402_v4 = vsel %vm392_vm10, %v400_v2, 2147483647  ;;  %v403_v5 = vsel %vm392_vm10, %v401_v3, 2147483647 }
 0x2ea   : > { %vm404_vm15 = vcmp.lt.s32.totalorder %v402_v4, %v403_v5 }
 0x2eb   : > { %v405_v7 = vsel %vm404_vm15, %v402_v4, %v403_v5 }
 0x2ec   : > { %v407_v8 = vshra.s32 %v405_v7, 16  ;;  %v406_v11 = vand.u32 65535, %v405_v7 }
 0x2ee   : > { %v409_v10 = vcvt.s32.f32 %v407_v8  ;;  %v408_v13 = vcvt.s32.f32 %v406_v11 }
 0x2f0   : > { %410 = vmin.xlane.f32.xlu0 %v409_v10 }
 0x379   : > { %v411_v12 = vpop.xlane.xlu0 %410 }
 0x37a   : > { %vm412_vm0 = vcmp.eq.f32.partialorder %v409_v10, %v411_v12  ;;  %v417_v15 = vcvt.f32.s32 %v411_v12 }
 0x37b   : > { %v413_v14 = vsel %vm412_vm0, %v408_v13, inf }
 0x37c   : > { %414 = vmin.xlane.f32.xlu1 %v413_v14  ;;  %v418_v17 = vshll.u32 %v417_v15, 16 }
 0x405   : > { %v415_v16 = vpop.xlane.xlu1 %414 }
 0x406   : > { %v416_v18 = vcvt.f32.s32 %v415_v16 }
 0x408   : > { %v419_v19 = vadd.s32 %v418_v17, %v416_v18 }
 0x40a   : > { %vm420_vm2 = vcmp.eq.s32.totalorder %v893_v35, %v419_v19  ;;  %vm421_vm3 = vcmp.eq.s32.totalorder %v896_v36, %v419_v19 }
 0x40b   : > { %v423_v21 = vsel %vm420_vm2, 1, %v773_v20  ;;  %v424_v22 = vsel %vm421_vm3, 1, %v773_v20  ;;  %vm471_vm2 = vcmp.eq.s32.totalorder %v862_v6, 2  ;;  %vm490_vm3 = vcmask 1043459  }
 0x40c   : > { %v428_v23 = vrot.slane %v423_v21, %v875_v9  ;;  %v432_v24 = vrot.slane %v424_v22, %v875_v9  ;;  %v525_v22 = vsub.s32 3, %v862_v6 }
 0x40e   : > { %vm433_vm8 = vcmp.eq.s32.totalorder %v428_v23, 1  ;;  %vm434_vm9 = vcmp.eq.s32.totalorder %v432_v24, 1 }
 0x40f   : > { %vm936_vm10 = vmand %vm422_vm5, %vm434_vm9  ;;  %v439_v28 = vsel %vm433_vm8, 2.0, %v390_v60  ;;  %v440_v29 = vsel %vm434_vm9, 2.0, %v391_v61 }
 0x410   : > { %v442_v31 = vsel %vm441_vm7, %v439_v28, inf  ;;  %v443_v9 = vsel %vm441_vm7, %v440_v29, inf  ;;  %vm944_vm11 = vmand %vm422_vm5, %vm433_vm8  ;;  %v438_v33 = vsel %vm936_vm10, 40.0, %v389_v26 }
 0x411   : > { %v444_v34 = vmin.f32 %v442_v31, %v443_v9  ;;  %v437_v37 = vsel %vm944_vm11, 40.0, %v388_v30 }
 0x413   : > { %445 = vmin.xlane.f32.xlu0 %v444_v34 }
 0x49c   : > { %v446_v38 = vpop.xlane.xlu0 %445 }
 0x49d   : > { %vm447_vm12 = vcmp.eq.f32.partialorder %v439_v28, %v446_v38  ;;  %vm448_vm13 = vcmp.eq.f32.partialorder %v440_v29, %v446_v38 }
 0x49e   : > { %v449_v39 = vsel %vm447_vm12, %v893_v35, 256  ;;  %v450_v40 = vsel %vm448_vm13, %v896_v36, 256 }
 0x49f   : > { %v451_v41 = vsel %vm441_vm7, %v449_v39, 2147483647  ;;  %v452_v42 = vsel %vm441_vm7, %v450_v40, 2147483647 }
 0x4a0   : > { %vm453_vm14 = vcmp.lt.s32.totalorder %v451_v41, %v452_v42 }
 0x4a1   : > { %v454_v43 = vsel %vm453_vm14, %v451_v41, %v452_v42  ;;  %vm520_vm14 = vcmp.eq.s32.totalorder %v862_v6, 3 }
 0x4a2   : > { %v456_v44 = vshra.s32 %v454_v43, 16  ;;  %v455_v46 = vand.u32 65535, %v454_v43 }
 0x4a4   : > { %v458_v45 = vcvt.s32.f32 %v456_v44  ;;  %v457_v48 = vcvt.s32.f32 %v455_v46 }
 0x4a6   : > { %459 = vmin.xlane.f32.xlu1 %v458_v45 }
 0x52f   : > { %v460_v47 = vpop.xlane.xlu1 %459 }
 0x530   : > { %vm461_vm15 = vcmp.eq.f32.partialorder %v458_v45, %v460_v47  ;;  %v466_v50 = vcvt.f32.s32 %v460_v47 }
 0x531   : > { %v462_v49 = vsel %vm461_vm15, %v457_v48, inf }
 0x532   : > { %463 = vmin.xlane.f32.xlu0 %v462_v49  ;;  %v467_v52 = vshll.u32 %v466_v50, 16 }
 0x5bb   : > { %v464_v51 = vpop.xlane.xlu0 %463 }
 0x5bc   : > { %v465_v53 = vcvt.f32.s32 %v464_v51 }
 0x5be   : > { %v468_v54 = vadd.s32 %v467_v52, %v465_v53 }
 0x5c0   : > { %vm469_vm0 = vcmp.eq.s32.totalorder %v893_v35, %v468_v54  ;;  %vm470_vm1 = vcmp.eq.s32.totalorder %v896_v36, %v468_v54 }
 0x5c1   : > { %v472_v56 = vsel %vm469_vm0, 1, %v773_v20  ;;  %v473_v57 = vsel %vm470_vm1, 1, %v773_v20 }
 0x5c2   : > { %v477_v58 = vrot.slane %v472_v56, %v476_v55  ;;  %v481_v59 = vrot.slane %v473_v57, %v476_v55 }
 0x5c4   : > { %vm482_vm4 = vcmp.eq.s32.totalorder %v477_v58, 1  ;;  %vm483_vm5 = vcmp.eq.s32.totalorder %v481_v59, 1 }
 0x5c5   : > { %vm485_vm6 = vmand %vm471_vm2, %vm483_vm5  ;;  %v488_v60 = vsel %vm482_vm4, 2.0, %v439_v28  ;;  %v489_v61 = vsel %vm483_vm5, 2.0, %v440_v29 }
 0x5c6   : > { %v487_v62 = vsel %vm485_vm6, 40.0, %v438_v33  ;;  %v491_v63 = vsel %vm490_vm3, %v488_v60, inf  ;;  %v492_v0 = vsel %vm490_vm3, %v489_v61, inf  ;;  %vm484_vm7 = vmand %vm471_vm2, %vm482_vm4 }
 0x5c7   : > { %v493_v1 = vmin.f32 %v491_v63, %v492_v0  ;;  %v486_v2 = vsel %vm484_vm7, 40.0, %v437_v37 }
 0x5c9   : > { %494 = vmin.xlane.f32.xlu1 %v493_v1 }
 0x652   : > { %v495_v3 = vpop.xlane.xlu1 %494 }
 0x653   : > { %vm496_vm8 = vcmp.eq.f32.partialorder %v488_v60, %v495_v3  ;;  %vm497_vm9 = vcmp.eq.f32.partialorder %v489_v61, %v495_v3 }
 0x654   : > { %v498_v4 = vsel %vm496_vm8, %v893_v35, 256  ;;  %v499_v5 = vsel %vm497_vm9, %v896_v36, 256 }
 0x655   : > { %v500_v7 = vsel %vm490_vm3, %v498_v4, 2147483647  ;;  %v501_v8 = vsel %vm490_vm3, %v499_v5, 2147483647 }
 0x656   : > { %vm502_vm10 = vcmp.lt.s32.totalorder %v500_v7, %v501_v8 }
 0x657   : > { %v503_v10 = vsel %vm502_vm10, %v500_v7, %v501_v8 }
 0x658   : > { %v505_v11 = vshra.s32 %v503_v10, 16  ;;  %v504_v13 = vand.u32 65535, %v503_v10 }
 0x65a   : > { %v507_v12 = vcvt.s32.f32 %v505_v11  ;;  %v506_v15 = vcvt.s32.f32 %v504_v13 }
 0x65c   : > { %508 = vmin.xlane.f32.xlu0 %v507_v12 }
 0x6e5   : > { %v509_v14 = vpop.xlane.xlu0 %508 }
 0x6e6   : > { %vm510_vm11 = vcmp.eq.f32.partialorder %v507_v12, %v509_v14  ;;  %v515_v17 = vcvt.f32.s32 %v509_v14 }
 0x6e7   : > { %v511_v16 = vsel %vm510_vm11, %v506_v15, inf }
 0x6e8   : > { %512 = vmin.xlane.f32.xlu1 %v511_v16  ;;  %v516_v19 = vshll.u32 %v515_v17, 16 }
 0x771   : > { %v513_v18 = vpop.xlane.xlu1 %512 }
 0x772   : > { %v514_v21 = vcvt.f32.s32 %v513_v18 }
 0x774   : > { %v517_v23 = vadd.s32 %v516_v19, %v514_v21 }
 0x776   : > { %vm518_vm12 = vcmp.eq.s32.totalorder %v893_v35, %v517_v23  ;;  %vm519_vm13 = vcmp.eq.s32.totalorder %v896_v36, %v517_v23 }
 0x777   : > { %v521_v24 = vsel %vm518_vm12, 1, %v773_v20  ;;  %v522_v25 = vsel %vm519_vm13, 1, %v773_v20 }
 0x778   : > { %v526_v26 = vrot.slane %v521_v24, %v525_v22  ;;  %v530_v27 = vrot.slane %v522_v25, %v525_v22 }
 0x77a   : > { %vm531_vm15 = vcmp.eq.s32.totalorder %v526_v26, 1  ;;  %vm532_vm0 = vcmp.eq.s32.totalorder %v530_v27, 1 }
 0x77b   : > { %vm533_vm1 = vmand %vm520_vm14, %vm531_vm15 }
 0x77c   : > { %vm534_vm2 = vmand %vm520_vm14, %vm532_vm0  ;;  %v535_v28 = vsel %vm533_vm1, 40.0, %v486_v2 }
 0x77d   : > { %v536_v35 = vsel %vm534_vm2, 40.0, %v487_v62 }
 0x77e   : > { %v539_v29 = vcombine.low %v535_v28, %v536_v35 }
 0x780   : > { %541 = vst [vmem:[%s243_s9] sm:$0xff] %v539_v29 }
 0x781   : > { %720 = shalt.err (!%p717_p3)
}
 0x782   : > { %s721_s23 = scalar_lea.hbm %s555_s13, 128  ;;  %s725_s6 = scalar_lea.hbm %s1013_s5, 256 }
 0x783   : > { %p722_p4 = scmp.ne.s32.totalorder %s555_s13, %s721_s23  ;;  %p726_p9 = scmp.lt.s32.totalorder %s555_s13, %s1013_s5 }
 0x784   : > { %p727_p10 = scmp.lt.s32.totalorder %s725_s6, %s721_s23 }
 0x785   : > { %p723_p7 = pnand %p722_p4, %p844_p5 }
 0x786   : > { %p728_p11 = por %p727_p10, %p726_p9 }
 0x787   : > { %p724_p8 = pneg %p723_p7 }
 0x789   : > { %p729_p12 = pnand %p728_p11, %p724_p8 }
 0x78b   : > { %732 = shalt.err (!%p729_p12)
}
 0x78c   : > { %656 = dma.vmem_to_hbm [thread:$0]  (%p844_p5), %s558_s10, 128, %s555_s13, %s543_s14  }
 0x78d PF: > { %p662_p13 = scmp.ge.s32.totalorder %s767_s21, 2  ;;  %s569_s8 = sand.u32 1, %s755_s18  }
 0x78e   : > { %s570_s9 = scalar_lea.sflag [#allocation3], %s569_s8 }
 0x78f   : > { %p659_p0 = pnand %p662_p13, %p848_p6 }
 0x791   : > { %p660_p1 = pneg %p659_p0 }
 0x793   : > { %750 = dma.done.wait (%p660_p1), %s570_s9, 128  }
 0x794   : > { %752 = vsyncadd (%p660_p1), %s570_s9, 4294967168  ;;  %p15_p2 = scmp.ge.s32.totalorder %s831_s24, 4   ;;  %s1024_s18 = smov %s759_s19 }
 0x795   : > { %s1025_s19 = smov %s763_s20  ;;  %s1026_s20 = smov %s842_s27 }
 0x796   : > { %s1027_s21 = smov %s831_s24  ;;  %17 = sbr.rel (!%p15_p2) target bundleno = 3 (0x3), region = 81 }
 0x79b   :  { %575 = vsyncpa [#allocation3], 1 }
 0x79c   :  { %577 = vsyncpa [#allocation3 + $0x1], 1 }

</bundles_post_ra>
